<compile_context>
chip_gen: v6e
topology: v6e:2x2x1
jax: 0.10.0
libtpu: 0.0.40
codegen_flags: <defaults>
</compile_context>

<pallas_src>
import jax
import jax.numpy as jnp
from jax import lax
from jax.experimental import pallas as pl
from jax.experimental.pallas import tpu as pltpu


_EPS = 1e-8
_F32_BYTES = 4  # tile budgets use f32-equivalent bytes (kernel upcasts)


def _pixel_norm_ref(x):
    """Pure-JAX reference / degenerate-shape fallback (matches PyTorch)."""
    xf = x.astype(jnp.float32)
    ms = jnp.mean(xf * xf, axis=1, keepdims=True)
    return (xf * lax.rsqrt(ms + _EPS)).astype(x.dtype)


# -----------------------------------------------------------------------------
# Kernels
# -----------------------------------------------------------------------------
def _pixel_norm_nchw_kernel(x_ref, o_ref):
    # x_ref / o_ref: (1, C, h_tile, w_tile) tiles in VMEM.
    x = x_ref[...].astype(jnp.float32)
    # C is a leading (untiled) block dim -> plain VPU adds, no sublane waste.
    ms = jnp.mean(x * x, axis=1, keepdims=True)              # (1, 1, h_t, w_t)
    o_ref[...] = (x * lax.rsqrt(ms + _EPS)).astype(o_ref.dtype)


def _pixel_norm_2d_kernel(x_ref, o_ref):
    # x_ref / o_ref: (n_tile, C) tiles, C on the lane axis.
    x = x_ref[...].astype(jnp.float32)
    ms = jnp.mean(x * x, axis=-1, keepdims=True)             # lane reduce (XLU)
    o_ref[...] = (x * lax.rsqrt(ms + _EPS)).astype(o_ref.dtype)


# -----------------------------------------------------------------------------
# Tiling helpers
# -----------------------------------------------------------------------------
def _target_block_bytes():
    # ~2 MiB blocks already sit at ~85%+ of HBM roofline on v5e/v6e; v7x's
    # ~2.3x higher HBM BW makes the fixed per-grid-step overhead relatively
    # larger, so use ~4 MiB there (2 in-bufs + 2 out-bufs stays well inside
    # the 32 MiB scoped-VMEM default).
    try:
        kind = jax.devices()[0].device_kind.lower()
    except Exception:
        kind = ""
    return (4 << 20) if ("v7" in kind or "7x" in kind) else (2 << 20)


def _round_down(x, m):
    return (x // m) * m


def _choose_spatial_tile(h, w, c, target_bytes):
    """Pick (h_tile, w_tile): multiples of (8, 128) or full-extent, ~target f32 bytes."""
    col_bytes = _F32_BYTES * c
    if col_bytes * h * w <= target_bytes:
        return h, w                                   # whole spatial extent fits
    budget_elems = max(1, target_bytes // col_bytes)
    h_min = h if h < 8 else 8
    if w <= 128:
        w_tile = w                                    # full-extent last dim: legal
    else:
        max_w = max(128, _round_down(budget_elems // h_min, 128))
        w_tile = max(128, min(_round_down(w, 128), max_w))
    max_h = budget_elems // w_tile
    if max_h >= h or h <= 8:
        h_tile = h
    else:
        h_tile = max(8, _round_down(max_h, 8))
    return h_tile, w_tile


# -----------------------------------------------------------------------------
# Wrappers
# -----------------------------------------------------------------------------
def _pixel_norm_nchw(x4):
    n, c, h, w = x4.shape
    target = _target_block_bytes()
    # Shrink the budget on large tensors so the grid has >= ~8 points (keeps
    # both v7x TensorCores fed), but never below one minimal legal block.
    total_f32 = _F32_BYTES * n * c * h * w
    min_block = _F32_BYTES * c * min(h, 8) * min(w, 128)
    target = max(min(target, total_f32 // 8), min_block)

    h_tile, w_tile = _choose_spatial_tile(h, w, c, target)
    block_f32_bytes = _F32_BYTES * c * h_tile * w_tile
    if block_f32_bytes > (8 << 20):
        # Degenerate shape (huge C with tiny, non-tileable spatial dims): the
        # minimal legal block would blow past scoped VMEM, so use the fused
        # XLA expression instead of risking spills / OOM (worst on v7x).
        # TODO(synk): add a C-split accumulator path for such shapes.
        return _pixel_norm_ref(x4)

    grid = (n, pl.cdiv(h, h_tile), pl.cdiv(w, w_tile))
    spec = pl.BlockSpec((1, c, h_tile, w_tile), lambda i, j, k: (i, 0, j, k))
    return pl.pallas_call(
        _pixel_norm_nchw_kernel,
        out_shape=jax.ShapeDtypeStruct((n, c, h, w), x4.dtype),
        grid_spec=pltpu.PrefetchScalarGridSpec(
            num_scalar_prefetch=0,
            grid=grid,
            in_specs=[spec],
            out_specs=spec,
        ),
        compiler_params=pltpu.CompilerParams(
            dimension_semantics=("parallel", "parallel", "parallel"),
        ),
    )(x4)


def _pixel_norm_2d(x2):
    n, c = x2.shape
    row_bytes = _F32_BYTES * c
    if row_bytes * min(n, 8) > (8 << 20):
        # TODO(synk): C-split accumulator path for enormous channel counts.
        return _pixel_norm_ref(x2)
    target = _target_block_bytes()
    rows_budget = max(8, target // row_bytes)
    if n <= 8 or rows_budget >= n:
        n_tile = n                                    # full-extent: always legal
    else:
        n_tile = max(8, _round_down(rows_budget, 8))

    grid = (pl.cdiv(n, n_tile),)
    spec = pl.BlockSpec((n_tile, c), lambda i: (i, 0))
    return pl.pallas_call(
        _pixel_norm_2d_kernel,
        out_shape=jax.ShapeDtypeStruct((n, c), x2.dtype),
        grid_spec=pltpu.PrefetchScalarGridSpec(
            num_scalar_prefetch=0,
            grid=grid,
            in_specs=[spec],
            out_specs=spec,
        ),
        compiler_params=pltpu.CompilerParams(
            dimension_semantics=("parallel",),
        ),
    )(x2)


def pixel_norm(x):
    """PixelNorm: x * rsqrt(mean(x**2, axis=1, keepdims=True) + 1e-8)."""
    if x.ndim < 2:
        raise ValueError("PixelNorm expects at least (N, C, ...)")
    if x.ndim == 2:
        return _pixel_norm_2d(x)
    if x.ndim == 3:
        # (N, C, L) -> (N, C, 1, L): inserting a size-1 dim keeps the minor
        # dims' layout (pure bitcast, no relayout copy).
        n, c, l = x.shape
        return _pixel_norm_nchw(x.reshape(n, c, 1, l)).reshape(x.shape)
    if x.ndim == 4:
        return _pixel_norm_nchw(x)
    # ndim >= 5: merge leading spatial dims; the minor (last) dim is untouched.
    n, c = x.shape[0], x.shape[1]
    lead = 1
    for d in x.shape[2:-1]:
        lead *= d
    return _pixel_norm_nchw(x.reshape(n, c, lead, x.shape[-1])).reshape(x.shape)


if __name__ == "__main__":
    key = jax.random.PRNGKey(0)
    k1, k2 = jax.random.split(key)

    # Small NCHW input consistent with the module's typical (feature map) use.
    x = jax.random.normal(k1, (2, 4, 16, 16), dtype=jnp.float32)
    out = jax.block_until_ready(pixel_norm(x))
    ref = _pixel_norm_ref(x)
    assert out.shape == x.shape and out.dtype == x.dtype
    assert jnp.allclose(out, ref, atol=1e-5, rtol=1e-5)

    # 2-D latent-code path (PixelNorm applied to a style/latent vector).
    z = jax.random.normal(k2, (8, 32), dtype=jnp.float32)
    out_z = jax.block_until_ready(pixel_norm(z))
    ref_z = _pixel_norm_ref(z)
    assert out_z.shape == z.shape and out_z.dtype == z.dtype
    assert jnp.allclose(out_z, ref_z, atol=1e-5, rtol=1e-5)

    print("KERNEL_OK")
</pallas_src>

<mosaic_0001>
module attributes {stable_mosaic.version = 11 : i64} {
  func.func @_pixel_norm_nchw_kernel(%arg0: i32, %arg1: i32, %arg2: i32, %arg3: memref<1x4x8x16xf32, #tpu.memory_space<vmem>>, %arg4: memref<1x4x8x16xf32, #tpu.memory_space<vmem>>) attributes {dimension_semantics = [#tpu.dimension_semantics<parallel>, #tpu.dimension_semantics<parallel>, #tpu.dimension_semantics<parallel>], iteration_bounds = array<i64: 2, 2, 1>, scalar_prefetch = 0 : i64, scratch_operands = 0 : i64, tpu.core_type = #tpu.core_type<tc>, window_params = [{transform_indices = @transform_0, window_bounds = array<i64: 1, 4, 8, 16>}, {transform_indices = @transform_1, window_bounds = array<i64: 1, 4, 8, 16>}]} {
    %c0 = arith.constant 0 : index
    %c0_0 = arith.constant 0 : index
    %c0_1 = arith.constant 0 : index
    %c0_2 = arith.constant 0 : index
    %0 = vector.load %arg3[%c0, %c0_0, %c0_1, %c0_2] : memref<1x4x8x16xf32, #tpu.memory_space<vmem>>, vector<1x4x8x16xf32>
    %1 = arith.mulf %0, %0 : vector<1x4x8x16xf32>
    %cst = arith.constant dense<0.000000e+00> : vector<1x8x16xf32>
    %2 = vector.multi_reduction <add>, %1, %cst [1] : vector<1x4x8x16xf32> to vector<1x8x16xf32>
    %3 = vector.shape_cast %2 : vector<1x8x16xf32> to vector<1x1x8x16xf32>
    %cst_3 = arith.constant 4.000000e+00 : f32
    %4 = vector.broadcast %cst_3 : f32 to vector<1x1x8x16xf32>
    %5 = arith.divf %3, %4 : vector<1x1x8x16xf32>
    %cst_4 = arith.constant 9.99999993E-9 : f32
    %6 = vector.broadcast %cst_4 : f32 to vector<1x1x8x16xf32>
    %7 = arith.addf %5, %6 : vector<1x1x8x16xf32>
    %8 = math.rsqrt %7 : vector<1x1x8x16xf32>
    %9 = vector.broadcast %8 : vector<1x1x8x16xf32> to vector<1x4x8x16xf32>
    %10 = arith.mulf %0, %9 : vector<1x4x8x16xf32>
    %c0_5 = arith.constant 0 : index
    %c0_6 = arith.constant 0 : index
    %c0_7 = arith.constant 0 : index
    %c0_8 = arith.constant 0 : index
    %11 = vector.load %arg4[%c0_5, %c0_6, %c0_7, %c0_8] : memref<1x4x8x16xf32, #tpu.memory_space<vmem>>, vector<1x4x8x16xf32>
    tpu.vector_store %arg4[%c0_5, %c0_6, %c0_7, %c0_8], %10 {strides = array<i32>} : memref<1x4x8x16xf32, #tpu.memory_space<vmem>>, vector<1x4x8x16xf32>,
    return
  }
  func.func @transform_0(%arg0: i32, %arg1: i32, %arg2: i32) -> (i32, i32, i32, i32) {
    %c0_i32 = arith.constant 0 : i32
    %c0_i32_0 = arith.constant 0 : i32
    return %arg0, %c0_i32, %arg1, %arg2 : i32, i32, i32, i32
  }
  func.func @transform_1(%arg0: i32, %arg1: i32, %arg2: i32) -> (i32, i32, i32, i32) {
    %c0_i32 = arith.constant 0 : i32
    %c0_i32_0 = arith.constant 0 : i32
    return %arg0, %c0_i32, %arg1, %arg2 : i32, i32, i32, i32
  }
}

</mosaic_0001>

<bundles_post_ra>
// kernel: tpu_custom_call.1
= control target key start
LH: loop header
LB: loop body
LE: loop exit
PB: predicated region body
PF: predicated region fallthrough
CT: control target
= control target key end

     0   :  { %6 = vsyncpa [#allocation3], 0  ;;  %s720_s0 = inlined_call_operand.hbm [shape: f32[2,4,16,16], index: 0, kind: input, shape index: {}]   ;;  %s721_s1 = inlined_call_operand.hbm [shape: f32[2,4,16,16], index: 1, kind: output, shape index: {}]  }
   0x1   :  { %8 = vsyncpa [#allocation3 + $0x1], 0 }
   0x2   :  { %9 = vsyncpa [#allocation4], 0 }
   0x3   :  { %11 = vsyncpa [#allocation4 + $0x1], 0  ;;  %s546_s6 = smov 0   ;;  %s548_s7 = smov 0  }
   0x4   :  { %s550_s8 = smov 0   ;;  %s552_s9 = smov 0  }
   0x5   :  { %s554_s10 = smov 0   ;;  %s556_s11 = smov 0  }
   0x6   :  { %s558_s12 = smov 0   ;;  %s560_s13 = smov 0  }
   0x7 LB: > { %s301_s14 = sadd.s32 4294967295, %s526_s13   ;;  %s302_s15 = sadd.s32 4294967294, %s526_s13   ;;  %s526_s13 = sphi %s560_s13, %s17_s13   ;;  %s522_s12 = sphi %s558_s12, %s733_s12   ;;  %s518_s11 = sphi %s556_s11, %s732_s11   ;;  %s514_s10 = sphi %s554_s10, %s731_s10   ;;  %s510_s9 = sphi %s552_s9, %s730_s9   ;;  %s506_s8 = sphi %s550_s8, %s729_s8   ;;  %s502_s7 = sphi %s548_s7, %s728_s7   ;;  %s498_s6 = sphi %s546_s6, %s727_s6  }
   0x8   : > { %s32_s16 = sadd.s32 1, %s518_s11  ;;  %s36_s17 = sadd.s32 1, %s522_s12 }
   0x9   : > { %p34_p0 = scmp.ge.s32.totalorder %s32_s16, 2  ;;  %s47_s18 = sadd.s32 1, %s506_s8 }
   0xa   : > { %p54_p1 = scmp.ne.s32.totalorder %s506_s8, %s502_s7  ;;  %p55_p2 = scmp.eq.s32.totalorder %s526_s13, 0 }
   0xb   : > { %s735_s16 = smov (%p34_p0, %s32_s16), 0  ;;  %s737_s17 = smov (!%p34_p0, %s36_s17), %s522_s12 }
   0xc   : > { %s41_s19 = ssub.s32 %s518_s11, %s735_s16  ;;  %p599_p3 = por %p55_p2, %p54_p1 }
   0xd   : > { %p38_p4 = scmp.ge.s32.totalorder %s737_s17, 2  ;;  %p60_p5 = scmp.ne.s32.totalorder %s502_s7, %s498_s6 }
   0xe   : > { %p61_p6 = scmp.eq.s32.totalorder %s301_s14, 0  ;;  %p88_p7 = scmp.eq.s32.totalorder %s301_s14, 3 }
   0xf   : > { %s739_s17 = smov (%p38_p4, %s737_s17), 0  ;;  %p94_p10 = scmp.eq.s32.totalorder %s302_s15, 3 }
  0x10   : > { %p607_p8 = por %p61_p6, %p60_p5  ;;  %p611_p9 = por %p88_p7, %p54_p1 }
  0x11   : > { %s40_s23 = ssub.s32 %s522_s12, %s739_s17  ;;  %p617_p12 = por %p94_p10, %p60_p5 }
  0x12   : > { %s42_s24 = sor.u32 %s41_s19, %s40_s23  ;;  %p328_p13 = scmp.lt.s32.totalorder %s526_s13, 4 }
  0x13   : > { %p45_p11 = scmp.eq.s32.totalorder %s42_s24, 0  ;;  %s114_s26 = sand.u32 1, %s506_s8  }
  0x14   : > { %s305_s28 = sshll.u32 %s114_s26, 5  ;;  %s306_s29 = sshll.u32 %s522_s12, 3 }
  0x15   : > { %s624_s27 = scalar_select %p45_p11, %s506_s8, %s47_s18  }
  0x16   : > { %s124_s30 = sadd.s32 %s518_s11, %s306_s29  ;;  %s118_s2 = scalar_lea.vmem [#allocation2], %s305_s28 }
  0x17   : > { %s127_s3 = sshll.u32 %s118_s2, 4  ;;  %s307_s4 = sshll.u32 %s124_s30, 7  ;;  %s128_s3 = int_to_ptr.vmem [resolvable:$true] %s127_s3 }
  0x18   : > { %s126_s15 = scalar_lea.hbm %s720_s0, %s307_s4  ;;  %p633_p0 = pnand %p328_p13, %p599_p3 }
  0x19   : > { %s115_s23 = scalar_lea.sflag [#allocation3], %s114_s26  ;;  %s415_s18 = scalar_lea.vmem %s128_s3, 512 }
  0x1a   : > { %p404_p1 = pneg %p633_p0  ;;  %p416_p2 = scmp.ne.s32.totalorder %s128_s3, %s415_s18 }
  0x1b   : > { %s528_s24 = smov [#allocation2]  }
  0x1c   : > { %p418_p4 = pnand %p416_p2, %p404_p1  ;;  %s420_s28 = sshll.u32 %s528_s24, 4  ;;  %s421_s28 = int_to_ptr.vmem [resolvable:$false] %s420_s28 }
  0x1d   : > { %s422_s29 = scalar_lea.vmem %s421_s28, 1024  ;;  %p423_p6 = scmp.lt.s32.totalorder %s128_s3, %s421_s28 }
  0x1e   : > { %p419_p5 = pneg %p418_p4  ;;  %p424_p7 = scmp.lt.s32.totalorder %s422_s29, %s415_s18 }
  0x20   : > { %p425_p10 = por %p424_p7, %p423_p6 }
  0x22   : > { %p426_p11 = pnand %p425_p10, %p419_p5 }
  0x24   : > { %429 = shalt.err (!%p426_p11)
}
  0x25   : > { %s529_s20 = smov 256   ;;  %s530_s26 = smov 128  }
  0x26   : > { %s531_s30 = smov 8   ;;  %p308_p3 = scmp.ge.s32.totalorder %s526_s13, 1 }
  0x27   : > { %323 = dma.hbm_to_vmem [thread:$0]  (!%p633_p0), %s126_s15, 512, %s128_s3, %s115_s23, %s529_s20, %s530_s26, %s531_s30  }
  0x28   : > { %p135_p13 = scmp.lt.s32.totalorder %s526_s13, 5 }
  0x2a   : > { %p136_p1 = pnand %p308_p3, %p135_p13 }
  0x2b   : > { %s644_s2 = sand.u32 (!%p136_p1), 1, %s502_s7  }
  0x2c   : > { %139 = sbr.rel (%p136_p1) target bundleno = 96 (0x60), region = 24  ;;  %s309_s4 = sshll.u32 (!%p136_p1), %s644_s2, 5 }
  0x2d   : > { %s142_s5 = scalar_lea.sflag (!%p136_p1), [#allocation3], %s644_s2  ;;  %s145_s14 = scalar_lea.vmem (!%p136_p1), [#allocation2], %s309_s4 }
  0x31   : > { %489 = dma.done.wait (%p607_p8), %s142_s5, 512  }
  0x32   : > { %491 = vsyncadd (%p607_p8), %s142_s5, 4294966784  ;;  %v164_v0 = vld [vmem:[%s145_s14] sm:$0xff]  ;;  %v165_v1 = vld [vmem:[%s145_s14 + $0x8] sm:$0xff]  ;;  %vm172_vm0 = vcmask 130048   ;;  %s312_s21 = sshll.u32 %s514_s10, 3  ;;  %s163_s15 = scalar_lea.vmem [#allocation5], %s309_s4 }
  0x33   : > { %v166_v2 = vld [vmem:[%s145_s14 + $0x10] sm:$0xff]  ;;  %v167_v3 = vld [vmem:[%s145_s14 + $0x18] sm:$0xff]  ;;  %v168_v4 = vmul.f32 %v164_v0, %v164_v0  ;;  %v169_v5 = vmul.f32 %v165_v1, %v165_v1  ;;  %s205_s3 = sadd.s32 %s510_s9, %s312_s21  ;;  %s208_s19 = sshll.u32 %s163_s15, 4  ;;  %s658_s19 = int_to_ptr.vmem [resolvable:$true] %s208_s19 }
  0x34   : > { %v170_v6 = vmul.f32 %v166_v2, %v166_v2  ;;  %v171_v7 = vmul.f32 %v167_v3, %v167_v3  ;;  %s313_s23 = sshll.u32 %s205_s3, 7  ;;  %s193_s9 = scalar_lea.sflag [#allocation4], %s644_s2 }
  0x35   : > { %v173_v8 = vsel %vm172_vm0, %v168_v4, 0.0  ;;  %v174_v9 = vsel %vm172_vm0, %v169_v5, 0.0  ;;  %s663_s28 = scalar_lea.hbm %s721_s1, %s313_s23  ;;  %s430_s10 = scalar_lea.vmem %s658_s19, 512 }
  0x36   : > { %v176_v10 = vsel %vm172_vm0, %v170_v6, 0.0  ;;  %v175_v11 = vadd.f32 %v174_v9, %v173_v8  ;;  %v178_v12 = vsel %vm172_vm0, %v171_v7, 0.0  ;;  %p431_p8 = scmp.ne.s32.totalorder %s658_s19, %s430_s10  ;;  %s532_s29 = smov [#allocation5]  }
  0x37   : > { %s434_s20 = sshll.u32 %s532_s29, 4  ;;  %s435_s20 = int_to_ptr.vmem [resolvable:$false] %s434_s20 }
  0x38   : > { %v177_v13 = vadd.f32 %v176_v10, %v175_v11  ;;  %p432_p0 = pnand %p431_p8, %p611_p9  ;;  %s436_s26 = scalar_lea.vmem %s435_s20, 1024 }
  0x39   : > { %p437_p4 = scmp.lt.s32.totalorder %s658_s19, %s435_s20  ;;  %p438_p5 = scmp.lt.s32.totalorder %s436_s26, %s430_s10 }
  0x3a   : > { %v179_v14 = vadd.f32 %v178_v12, %v177_v13  ;;  %p433_p2 = pneg %p432_p0 }
  0x3b   : > { %p439_p6 = por %p438_p5, %p437_p4 }
  0x3c   : > { %v181_v15 = vmul.f32 0.25, %v179_v14 }
  0x3d   : > { %p440_p7 = pnand %p439_p6, %p433_p2 }
  0x3e   : > { %v182_v16 = vadd.f32 1e-08, %v181_v15 }
  0x40   : > { %400 = vrsqrt.f32 %v182_v16 }
  0x4d   : > { %v401_v17 = vpop.eup %400 }
  0x4e   : > { %v184_v18 = vmul.f32 %v401_v17, %v164_v0  ;;  %v185_v19 = vmul.f32 %v401_v17, %v165_v1  ;;  %v186_v20 = vmul.f32 %v401_v17, %v166_v2  ;;  %v187_v21 = vmul.f32 %v401_v17, %v167_v3 }
  0x50   : > { %188 = vst.msk [vmem:[%s163_s15] sm:$0xff] %vm172_vm0, %v184_v18  ;;  %189 = vst.msk [vmem:[%s163_s15 + $0x8] sm:$0xff] %vm172_vm0, %v185_v19 }
  0x51   : > { %190 = vst.msk [vmem:[%s163_s15 + $0x10] sm:$0xff] %vm172_vm0, %v186_v20  ;;  %191 = vst.msk [vmem:[%s163_s15 + $0x18] sm:$0xff] %vm172_vm0, %v187_v21 }
  0x52   : > { %443 = shalt.err (!%p440_p7)
}
  0x53   : > { %s444_s30 = scalar_lea.hbm %s663_s28, 512  ;;  %s448_s14 = scalar_lea.hbm %s721_s1, 2048 }
  0x54   : > { %p445_p10 = scmp.ne.s32.totalorder %s663_s28, %s444_s30  ;;  %p449_p13 = scmp.lt.s32.totalorder %s663_s28, %s721_s1 }
  0x55   : > { %p450_p1 = scmp.lt.s32.totalorder %s448_s14, %s444_s30 }
  0x56   : > { %p446_p11 = pnand %p445_p10, %p611_p9 }
  0x57   : > { %p451_p8 = por %p450_p1, %p449_p13 }
  0x58   : > { %p447_p3 = pneg %p446_p11 }
  0x5a   : > { %p452_p0 = pnand %p451_p8, %p447_p3 }
  0x5c   : > { %455 = shalt.err (!%p452_p0)
}
  0x5d   : > { %s533_s15 = smov 128   ;;  %s534_s23 = smov 256  }
  0x5e   : > { %s535_s18 = smov 8  }
  0x5f   : > { %318 = dma.vmem_to_hbm [thread:$0]  (%p611_p9), %s658_s19, 512, %s663_s28, %s193_s9, %s533_s15, %s534_s23, %s535_s18  }
  0x60 PF: > { %p329_p2 = scmp.ge.s32.totalorder %s526_s13, 2  ;;  %s223_s24 = sand.u32 1, %s498_s6  }
  0x61   : > { %s224_s10 = scalar_lea.sflag [#allocation4], %s223_s24 }
  0x62   : > { %p325_p4 = pnand %p329_p2, %p617_p12 }
  0x64   : > { %p326_p5 = pneg %p325_p4 }
  0x66   : > { %493 = dma.done.wait (%p326_p5), %s224_s10, 512  }
  0x67   : > { %495 = vsyncadd (%p326_p5), %s224_s10, 4294966784  ;;  %s17_s13 = sadd.s32 1, %s526_s13   ;;  %s727_s6 = smov %s502_s7 }
  0x68   : > { %p14_p6 = scmp.ge.s32.totalorder %s17_s13, 6   ;;  %s728_s7 = smov %s506_s8 }
  0x69   : > { %s729_s8 = smov %s624_s27  ;;  %s730_s9 = smov %s518_s11 }
  0x6a   : > { %s731_s10 = smov %s522_s12  ;;  %s732_s11 = smov %s735_s16 }
  0x6b   : > { %s733_s12 = smov %s739_s17  ;;  %16 = sbr.rel (!%p14_p6) target bundleno = 7 (0x7), region = 69 }
  0x70   :  { %229 = vsyncpa [#allocation3], 1 }
  0x71   :  { %231 = vsyncpa [#allocation3 + $0x1], 1 }
  0x72   :  { %232 = vsyncpa [#allocation4], 1 }
  0x73   :  { %234 = vsyncpa [#allocation4 + $0x1], 1 }

</bundles_post_ra>
